<compile_context>
chip_gen: v5e
topology: v5e:2x2
jax: 0.10.0
libtpu: 0.0.40
codegen_flags: <defaults>
</compile_context>

<pallas_src>
import jax
import jax.numpy as jnp
from jax.experimental import pallas as pl
from jax.experimental.pallas import tpu as pltpu


def _make_i_tv_kernel(W, inv_count_h, inv_count_w, inv_b):
    def kernel(x_ref, out_ref, acc_ref):
        step = pl.program_id(0)

        @pl.when(step == 0)
        def _init():
            acc_ref[0] = jnp.float32(0.0)

        # x_ref: (bn, H*W) block, one image per row (lane-dense layout).
        x = x_ref[...].astype(jnp.float32)
        bn, L = x_ref.shape
        lane = jax.lax.broadcasted_iota(jnp.int32, (bn, L), 1)

        # --- width-direction TV -------------------------------------------
        # roll(+1) along lanes: xw[:, l] = x[:, l-1]; diff valid where l % W != 0
        xw = pltpu.roll(x, shift=1, axis=1)
        dw = jnp.where((lane % W) != 0, x - xw, 0.0)
        w_tv = jnp.sum(dw * dw)

        # --- height-direction TV ------------------------------------------
        # roll(+W) along lanes: xh[:, l] = x[:, l-W]; diff valid where l >= W
        xh = pltpu.roll(x, shift=W, axis=1)
        dh = jnp.where(lane >= W, x - xh, 0.0)
        h_tv = jnp.sum(dh * dh)

        acc_ref[0] += h_tv * inv_count_h + w_tv * inv_count_w

        @pl.when(step == pl.num_programs(0) - 1)
        def _finalize():
            out_ref[0, 0] = acc_ref[0] * inv_b

    return kernel


def i_tv(x, *, vmem_block_bytes=2 * 1024 * 1024):
    """Total-variation loss, matching PyTorch I_TV.forward semantics (NCHW)."""
    B, C, H, W = x.shape
    N = B * C
    L = H * W
    count_h = (H - 1) * W
    count_w = H * (W - 1)
    # PyTorch divides by zero when H==1/W==1 (gives nan for 0/0); mirror that.
    inv_count_h = (1.0 / count_h) if count_h > 0 else float("nan")
    inv_count_w = (1.0 / count_w) if count_w > 0 else float("nan")
    inv_b = 1.0 / B

    # Lane-dense view: one image per row.
    x2 = x.reshape(N, L)

    # Pick a block of images whose f32 footprint stays within a conservative
    # budget (double-buffered input + in-kernel temporaries stay well under
    # the default scoped VMEM limit on v5e/v6e/v7x).
    bytes_per_image = L * 4
    bn = max(1, vmem_block_bytes // bytes_per_image)
    if bn >= N:
        bn = N  # whole axis in one block (block dim == full dim, no alignment rule)
    else:
        bn = max(8, (bn // 8) * 8)  # keep sublane blocking 8-aligned
    n_pad = (-N) % bn
    if n_pad:
        # Zero images contribute exactly zero to both TV sums.
        x2 = jnp.pad(x2, ((0, n_pad), (0, 0)))
    n_padded = N + n_pad
    grid = (n_padded // bn,)

    kernel = _make_i_tv_kernel(W, inv_count_h, inv_count_w, inv_b)

    out = pl.pallas_call(
        kernel,
        out_shape=jax.ShapeDtypeStruct((1, 1), jnp.float32),
        grid_spec=pltpu.PrefetchScalarGridSpec(
            num_scalar_prefetch=0,
            grid=grid,
            in_specs=[pl.BlockSpec((bn, L), lambda i: (i, 0))],
            out_specs=pl.BlockSpec(memory_space=pltpu.MemorySpace.SMEM),
            scratch_shapes=[pltpu.SMEM((1,), jnp.float32)],
        ),
        compiler_params=pltpu.CompilerParams(
            dimension_semantics=("arbitrary",),
        ),
    )(x2)
    return out[0, 0]

    # TODO(synk): on v7x, emit lane-dense per-block partial sums with a
    # "parallel" grid axis to use both TensorCores; single-core accumulator
    # kept here for v5e/v6e simplicity.


def _i_tv_ref(x):
    x = x.astype(jnp.float32)
    B, _, H, W = x.shape
    count_h = (H - 1) * W
    count_w = H * (W - 1)
    h_tv = jnp.sum((x[:, :, 1:, :] - x[:, :, : H - 1, :]) ** 2)
    w_tv = jnp.sum((x[:, :, :, 1:] - x[:, :, :, : W - 1]) ** 2)
    return (h_tv / count_h + w_tv / count_w) / B


if __name__ == "__main__":
    key = jax.random.PRNGKey(0)
    k0, k1 = jax.random.split(key)

    # Primary case: batch=2, channels=4, spatial=16x16 (NCHW, like the module).
    x = jax.random.normal(k0, (2, 4, 16, 16), dtype=jnp.float32)
    out = jax.block_until_ready(i_tv(x))
    ref = jax.block_until_ready(_i_tv_ref(x))
    assert jnp.allclose(out, ref, rtol=1e-5, atol=1e-5), (out, ref)

    # Second case: force a multi-step grid (streaming accumulation + N padding).
    x2 = jax.random.normal(k1, (3, 5, 16, 16), dtype=jnp.float32)
    out2 = jax.block_until_ready(i_tv(x2, vmem_block_bytes=8 * 1024))
    ref2 = jax.block_until_ready(_i_tv_ref(x2))
    assert jnp.allclose(out2, ref2, rtol=1e-5, atol=1e-5), (out2, ref2)

    print("KERNEL_OK")
</pallas_src>

<mosaic_0001>
module attributes {stable_mosaic.version = 11 : i64} {
  func.func @kernel(%arg0: i32, %arg1: memref<8x256xf32, #tpu.memory_space<vmem>>, %arg2: memref<1x1xf32, #tpu.memory_space<smem>>, %arg3: memref<1xf32, #tpu.memory_space<smem>>) attributes {dimension_semantics = [#tpu.dimension_semantics<arbitrary>], iteration_bounds = array<i64: 1>, scalar_prefetch = 0 : i64, scratch_operands = 1 : i64, tpu.core_type = #tpu.core_type<tc>, window_params = [{transform_indices = @transform_0, window_bounds = array<i64: 8, 256>}, {transform_indices = @transform_1, window_bounds = array<i64: 1, 1>}]} {
    %c0_i32 = arith.constant 0 : i32
    %0 = arith.cmpi eq, %arg0, %c0_i32 : i32
    %1 = arith.extui %0 : i1 to i32
    %c0_i32_0 = arith.constant 0 : i32
    %2 = arith.cmpi ne, %1, %c0_i32_0 : i32
    scf.if %2 {
      %cst_19 = arith.constant 0.000000e+00 : f32
      %c0_20 = arith.constant 0 : index
      %52 = memref.load %arg3[%c0_20] : memref<1xf32, #tpu.memory_space<smem>>
      memref.store %cst_19, %arg3[%c0_20] : memref<1xf32, #tpu.memory_space<smem>>
    } else {
    }
    %c0 = arith.constant 0 : index
    %c0_1 = arith.constant 0 : index
    %3 = vector.load %arg1[%c0, %c0_1] : memref<8x256xf32, #tpu.memory_space<vmem>>, vector<8x256xf32>
    %4 = tpu.iota {dimensions = array<i32: 1>} : vector<8x256xi32>
    %c1_i32 = arith.constant 1 : i32
    %5 = tpu.dynamic_rotate %3 by %c1_i32 dim 1 : vector<8x256xf32>, i32 -> vector<8x256xf32>
    %c16_i32 = arith.constant 16 : i32
    %c0_i32_2 = arith.constant 0 : i32
    %6 = arith.cmpi eq, %c16_i32, %c0_i32_2 : i32
    %c1_i32_3 = arith.constant 1 : i32
    %7 = arith.select %6, %c1_i32_3, %c16_i32 : i32
    %8 = vector.broadcast %7 : i32 to vector<8x256xi32>
    %9 = arith.remsi %4, %8 : vector<8x256xi32>
    %c0_i32_4 = arith.constant 0 : i32
    %10 = vector.broadcast %c0_i32_4 : i32 to vector<8x256xi32>
    %11 = arith.cmpi ne, %9, %10 : vector<8x256xi32>
    %c0_i32_5 = arith.constant 0 : i32
    %12 = vector.broadcast %c0_i32_5 : i32 to vector<8x256xi32>
    %13 = arith.cmpi slt, %9, %12 : vector<8x256xi32>
    %c0_i32_6 = arith.constant 0 : i32
    %14 = arith.cmpi slt, %7, %c0_i32_6 : i32
    %15 = vector.broadcast %14 : i1 to vector<8x256xi1>
    %16 = vector.broadcast %15 : vector<8x256xi1> to vector<8x256xi1>
    %17 = arith.xori %13, %16 : vector<8x256xi1>
    %18 = arith.andi %17, %11 : vector<8x256xi1>
    %19 = vector.broadcast %7 : i32 to vector<8x256xi32>
    %20 = arith.addi %9, %19 : vector<8x256xi32>
    %21 = arith.select %18, %20, %9 : vector<8x256xi1>, vector<8x256xi32>
    %c0_i32_7 = arith.constant 0 : i32
    %22 = vector.broadcast %c0_i32_7 : i32 to vector<8x256xi32>
    %23 = arith.cmpi ne, %21, %22 : vector<8x256xi32>
    %24 = arith.subf %3, %5 : vector<8x256xf32>
    %cst = arith.constant 0.000000e+00 : f32
    %25 = vector.broadcast %cst : f32 to vector<8x256xf32>
    %26 = arith.select %23, %24, %25 : vector<8x256xi1>, vector<8x256xf32>
    %27 = arith.mulf %26, %26 : vector<8x256xf32>
    %28 = vector.shape_cast %27 : vector<8x256xf32> to vector<1x8x256xf32>
    %cst_8 = arith.constant dense<0.000000e+00> : vector<1xf32>
    %29 = vector.multi_reduction <add>, %28, %cst_8 [1, 2] : vector<1x8x256xf32> to vector<1xf32>
    %30 = vector.shape_cast %29 : vector<1xf32> to vector<1x1x1xf32>
    %31 = vector.extract %30[0, 0, 0] : f32 from vector<1x1x1xf32>
    %c16_i32_9 = arith.constant 16 : i32
    %32 = tpu.dynamic_rotate %3 by %c16_i32_9 dim 1 : vector<8x256xf32>, i32 -> vector<8x256xf32>
    %c16_i32_10 = arith.constant 16 : i32
    %33 = vector.broadcast %c16_i32_10 : i32 to vector<8x256xi32>
    %34 = arith.cmpi sge, %4, %33 : vector<8x256xi32>
    %35 = arith.subf %3, %32 : vector<8x256xf32>
    %cst_11 = arith.constant 0.000000e+00 : f32
    %36 = vector.broadcast %cst_11 : f32 to vector<8x256xf32>
    %37 = arith.select %34, %35, %36 : vector<8x256xi1>, vector<8x256xf32>
    %38 = arith.mulf %37, %37 : vector<8x256xf32>
    %39 = vector.shape_cast %38 : vector<8x256xf32> to vector<1x8x256xf32>
    %cst_12 = arith.constant dense<0.000000e+00> : vector<1xf32>
    %40 = vector.multi_reduction <add>, %39, %cst_12 [1, 2] : vector<1x8x256xf32> to vector<1xf32>
    %41 = vector.shape_cast %40 : vector<1xf32> to vector<1x1x1xf32>
    %42 = vector.extract %41[0, 0, 0] : f32 from vector<1x1x1xf32>
    %c0_13 = arith.constant 0 : index
    %43 = memref.load %arg3[%c0_13] : memref<1xf32, #tpu.memory_space<smem>>
    %cst_14 = arith.constant 0.00416666688 : f32
    %44 = arith.mulf %42, %cst_14 : f32
    %cst_15 = arith.constant 0.00416666688 : f32
    %45 = arith.mulf %31, %cst_15 : f32
    %46 = arith.addf %44, %45 : f32
    %47 = arith.addf %43, %46 : f32
    %c0_16 = arith.constant 0 : index
    %48 = memref.load %arg3[%c0_16] : memref<1xf32, #tpu.memory_space<smem>>
    memref.store %47, %arg3[%c0_16] : memref<1xf32, #tpu.memory_space<smem>>
    %c0_i32_17 = arith.constant 0 : i32
    %49 = arith.cmpi eq, %arg0, %c0_i32_17 : i32
    %50 = arith.extui %49 : i1 to i32
    %c0_i32_18 = arith.constant 0 : i32
    %51 = arith.cmpi ne, %50, %c0_i32_18 : i32
    scf.if %51 {
      %c0_19 = arith.constant 0 : index
      %52 = memref.load %arg3[%c0_19] : memref<1xf32, #tpu.memory_space<smem>>
      %cst_20 = arith.constant 5.000000e-01 : f32
      %53 = arith.mulf %52, %cst_20 : f32
      %c0_21 = arith.constant 0 : index
      %c0_22 = arith.constant 0 : index
      %54 = memref.load %arg2[%c0_21, %c0_22] : memref<1x1xf32, #tpu.memory_space<smem>>
      memref.store %53, %arg2[%c0_21, %c0_22] : memref<1x1xf32, #tpu.memory_space<smem>>
    } else {
    }
    return
  }
  func.func @transform_0(%arg0: i32) -> (i32, i32) {
    %c0_i32 = arith.constant 0 : i32
    %c0_i32_0 = arith.constant 0 : i32
    return %arg0, %c0_i32 : i32, i32
  }
  func.func @transform_1(%arg0: i32) -> (i32, i32) {
    %c0_i32 = arith.constant 0 : i32
    %c0_i32_0 = arith.constant 0 : i32
    %c0_i32_1 = arith.constant 0 : i32
    return %c0_i32, %c0_i32_0 : i32, i32
  }
}

</mosaic_0001>

<bundles_post_ra>
// kernel: tpu_custom_call.1
= control target key start
LH: loop header
LB: loop body
LE: loop exit
PB: predicated region body
PF: predicated region fallthrough
CT: control target
= control target key end

     0   :  { %6 = vsyncpa [#allocation4], 0  ;;  %s206_s0 = inlined_call_operand.hbm [shape: f32[8,256], index: 0, kind: input, shape index: {}]   ;;  %s207_s1 = inlined_call_operand.hbm [shape: f32[1,1], index: 1, kind: output, shape index: {}]  }
   0x1   :  { %7 = vsyncpa [#allocation5], 0  ;;  %s13_s8 = sshll.u32 %s206_s0, 4  ;;  %s186_s9 = smov [#allocation3]   ;;  %s14_s8 = int_to_ptr.hbm [resolvable:$true] %s13_s8 }
   0x2   :  { %s15_s10 = sshll.u32 %s186_s9, 4  ;;  %s16_s10 = int_to_ptr.vmem [resolvable:$true] %s15_s10 }
   0x3   :  { %18 = dma.hbm_to_vmem [thread:$0]  %s14_s8, 256, %s16_s10, [#allocation4]  }
   0x4   :  { %182 = dma.done.wait [#allocation4], 256  }
   0x5   :  { %183 = vsyncadd [#allocation4], 4294967040  ;;  %v29_v0 = vld [vmem:[#allocation3] sm:$0xff]  ;;  %s187_s11 = smov 16   ;;  %s188_s12 = smov 1   ;;  %v30_v1 = vld [vmem:[#allocation3 + $0x8] sm:$0xff]  ;;  %v31_v2 = vlaneseq }
   0x6   :  { %83 = vrot.lane.b32.xlu1 %v29_v0, %s187_s11  ;;  %34 = vrot.lane.b32.xlu0 %v29_v0, %s188_s12  ;;  %s127_s18 = sshll.u32 %s207_s1, 4  ;;  %s189_s21 = smov [#allocation6]   ;;  %s128_s18 = int_to_ptr.hbm [resolvable:$true] %s127_s18 }
   0x7   :  { %v32_v3 = vand.u32 127, %v31_v2 }
   0x9   :  { %v33_v6 = vadd.s32 128, %v32_v3  ;;  %v45_v7 = vand.u32 15, %v32_v3  ;;  %vm87_vm0 = vcmp.lt.s32.totalorder %v32_v3, 16  ;;  %vm38_vm1 = vcmp.lt.s32.totalorder %v32_v3, 1 }
   0xa   :  { %vm90_vm4 = vcmp.ge.s32.totalorder %v32_v3, 16 }
   0xb   :  { %v52_v8 = vand.u32 15, %v33_v6  ;;  %vm65_vm2 = vcmp.ne.s32.totalorder %v45_v7, 0 }
   0xd   :  { %vm66_vm3 = vcmp.ne.s32.totalorder %v52_v8, 0 }
   0xe   :  { %85 = vrot.lane.b32.xlu1 %v30_v1, %s187_s11  ;;  %36 = vrot.lane.b32.xlu0 %v30_v1, %s188_s12 }
  0x78   :  { %v84_v4 = vpop.permute.xlu1 %83  ;;  %v35_v5 = vpop.permute.xlu0 %34 }
  0x80   :  { %v86_v9 = vpop.permute.xlu1 %85  ;;  %v37_v10 = vpop.permute.xlu0 %36 }
  0x81   :  { %v89_v11 = vsel %vm87_vm0, %v86_v9, %v84_v4  ;;  %v39_v12 = vsel %vm38_vm1, %v35_v5, %v37_v10  ;;  %v40_v13 = vsel %vm38_vm1, %v37_v10, %v35_v5  ;;  %v88_v16 = vsel %vm87_vm0, %v84_v4, %v86_v9 }
  0x82   :  { %v67_v14 = vsub.f32 %v29_v0, %v40_v13  ;;  %v68_v15 = vsub.f32 %v30_v1, %v39_v12  ;;  %v92_v17 = vsub.f32 %v29_v0, %v89_v11  ;;  %v93_v22 = vsub.f32 %v30_v1, %v88_v16 }
  0x84   :  { %v69_v18 = vsel %vm65_vm2, %v67_v14, 0.0  ;;  %v70_v19 = vsel %vm66_vm3, %v68_v15, 0.0  ;;  %v94_v24 = vsel %vm90_vm4, %v92_v17, 0.0  ;;  %v97_v25 = vmul.f32 %v93_v22, %v93_v22 }
  0x85   :  { %v71_v20 = vmul.f32 %v69_v18, %v69_v18  ;;  %v72_v21 = vmul.f32 %v70_v19, %v70_v19  ;;  %v96_v26 = vmul.f32 %v94_v24, %v94_v24 }
  0x87   :  { %v73_v23 = vadd.f32 %v72_v21, %v71_v20  ;;  %v98_v27 = vadd.f32 %v97_v25, %v96_v26 }
  0x89   :  { %74 = vadd.xlane.f32.xlu2 %v73_v23 }
  0x91   :  { %99 = vadd.xlane.f32.xlu2 %v98_v27 }
  0xfc   :  { %v75_v28 = vpop.xlane.xlu2 %74 }
  0xfd   :  { %v76_v29 = vrot.slane %v75_v28, 4 }
  0xff   :  { %v77_v30 = vadd.f32 %v76_v29, %v75_v28 }
 0x101   :  { %v78_v31 = vrot.slane %v77_v30, 2 }
 0x103   :  { %v79_v32 = vadd.f32 %v78_v31, %v77_v30 }
 0x104   :  { %v100_v33 = vpop.xlane.xlu2 %99 }
 0x105   :  { %v101_v34 = vrot.slane %v100_v33, 4  ;;  %v80_v35 = vrot.slane %v79_v32, 1 }
 0x107   :  { %v102_v36 = vadd.f32 %v101_v34, %v100_v33  ;;  %v81_v37 = vadd.f32 %v80_v35, %v79_v32 }
 0x109   :  { %v103_v38 = vrot.slane %v102_v36, 2  ;;  %138 = vpush %v81_v37 }
 0x10b   :  { %v104_v39 = vadd.f32 %v103_v38, %v102_v36 }
 0x10d   :  { %v105_v40 = vrot.slane %v104_v39, 1 }
 0x10f   :  { %v106_v41 = vadd.f32 %v105_v40, %v104_v39 }
 0x111   :  { %140 = vpush %v106_v41 }
 0x13a   :  { %s139_s0 = spop %138 }
 0x13b   :  { %s110_s13 = smul.f32 0.004166667, %s139_s0 }
 0x142   :  { %s141_s14 = spop %140 }
 0x143   :  { %s109_s15 = smul.f32 0.004166667, %s141_s14 }
 0x145   :  { %s111_s19 = sadd.f32 %s110_s13, %s109_s15 }
 0x147   :  { %s119_s20 = smul.f32 0.5, %s111_s19 }
 0x149   :  { %121 = sst [smem:[#allocation6]] %s119_s20 }
 0x14a   :  { %130 = dma.smem_to_hbm %s189_s21, 16, %s128_s18, [#allocation5]  }
 0x14b   :  { %184 = dma.done.wait [#allocation5], 16  }
 0x14c   :  { %185 = vsyncadd [#allocation5], 4294967280 }
 0x14d   :  { %135 = sfence }
 0x14e   :  { %136 = vsyncpa [#allocation4], 1 }
 0x14f   :  { %137 = vsyncpa [#allocation5], 1 }

</bundles_post_ra>
